<compile_context>
chip_gen: v6e
topology: v6e:2x2x1
jax: 0.10.0
libtpu: 0.0.40
codegen_flags: <defaults>
</compile_context>

<pallas_src>
import functools

import jax
import jax.numpy as jnp
from jax.experimental import pallas as pl
from jax.experimental.pallas import tpu as pltpu

LANES = 128
SUBLANES = 8
# 8192 rows * 128 lanes * 4 B = 4 MiB per f32 input block; 2 inputs x 2
# pipeline buffers = 16 MiB buffered, well under the 32 MiB scoped-VMEM limit
# requested below (physical VMEM: 128 / 128 / 64 MiB on v5e / v6e / v7x).
MAX_ROW_TILE = 8192
# Below this many elements, pallas_call launch + single-block DMA overhead
# dominates; XLA's fused elementwise+reduce is as fast or faster.
MIN_PALLAS_ELEMS = 64 * 1024


def _triplet_loss_ref(pos, neg, margin):
    d = pos.astype(jnp.float32) - neg.astype(jnp.float32) + jnp.float32(margin)
    return jnp.mean(jnp.maximum(d, jnp.float32(0.0)))


def _triplet_loss_kernel(pos_ref, neg_ref, out_ref, *, margin, total, row_tile):
    i = pl.program_id(0)

    pos = pos_ref[...].astype(jnp.float32)
    neg = neg_ref[...].astype(jnp.float32)
    hinge = jnp.maximum(pos - neg + jnp.float32(margin), jnp.float32(0.0))

    # Mask the tail (ragged N and/or the partial final grid block): compare
    # each element's flat index against the true N.  A handful of VPU ops per
    # vreg, fully hidden under the streaming DMA.
    # NOTE: int32 flat index limits N to < 2**31 elements.
    row = jax.lax.broadcasted_iota(jnp.int32, (row_tile, LANES), 0)
    lane = jax.lax.broadcasted_iota(jnp.int32, (row_tile, LANES), 1)
    flat = (i * row_tile + row) * LANES + lane
    hinge = jnp.where(flat < total, hinge, jnp.float32(0.0))

    # Reduce only over the "groups of 8 sublanes" axis: pure vreg adds on the
    # VPU.  Each grid step writes its own lane-resident (8, 128) partial sum,
    # so there is no grid-carried accumulator and the grid axis is parallel.
    out_ref[0] = jnp.sum(hinge.reshape(-1, SUBLANES, LANES), axis=0)


def triplet_loss(pos_dist, neg_dist, margin=1.0, *, use_pallas=None,
                 max_row_tile=MAX_ROW_TILE):
    """Pallas TPU implementation of TripletLoss.forward.

    pos_dist / neg_dist: arrays of identical shape (any size N, any float or
    integer dtype).  Returns scalar f32 = mean(clamp(pos - neg + margin, 0)).
    """
    assert pos_dist.shape == neg_dist.shape
    n = pos_dist.size
    assert n > 0

    if use_pallas is None:
        use_pallas = n >= MIN_PALLAS_ELEMS
    if not use_pallas:
        return _triplet_loss_ref(pos_dist, neg_dist, margin)

    # Native-dtype, lane-dense slabs.  Zero-copy (bitcast reshape) when N is
    # already a multiple of 8*128; otherwise pad only to the next 1024
    # boundary (pad values never matter — the kernel masks by true N).
    chunk = SUBLANES * LANES
    n_padded = -(-n // chunk) * chunk
    rows = n_padded // LANES

    def to_slab(x):
        x = jnp.ravel(x)
        if n_padded != n:
            x = jnp.pad(x, (0, n_padded - n))
        return x.reshape(rows, LANES)

    pos2d = to_slab(pos_dist)
    neg2d = to_slab(neg_dist)

    row_tile = min(int(max_row_tile), rows)
    row_tile = -(-row_tile // SUBLANES) * SUBLANES
    num_blocks = -(-rows // row_tile)

    kernel = functools.partial(
        _triplet_loss_kernel, margin=float(margin), total=n, row_tile=row_tile
    )

    bytes_accessed = (
        n * pos2d.dtype.itemsize
        + n * neg2d.dtype.itemsize
        + num_blocks * SUBLANES * LANES * 4
    )

    partials = pl.pallas_call(
        kernel,
        out_shape=jax.ShapeDtypeStruct((num_blocks, SUBLANES, LANES), jnp.float32),
        grid_spec=pltpu.PrefetchScalarGridSpec(
            num_scalar_prefetch=0,
            grid=(num_blocks,),
            in_specs=[
                pl.BlockSpec((row_tile, LANES), lambda i: (i, 0)),
                pl.BlockSpec((row_tile, LANES), lambda i: (i, 0)),
            ],
            out_specs=pl.BlockSpec((1, SUBLANES, LANES), lambda i: (i, 0, 0)),
        ),
        compiler_params=pltpu.CompilerParams(
            dimension_semantics=("parallel",),
            vmem_limit_bytes=32 * 1024 * 1024,
        ),
        cost_estimate=pl.CostEstimate(
            flops=5 * n, transcendentals=0, bytes_accessed=int(bytes_accessed)
        ),
    )(pos2d, neg2d)

    # Tiny final reduce (num_blocks * 1024 f32) + mean over the true N.
    return jnp.sum(partials) / jnp.float32(n)


if __name__ == "__main__":
    key = jax.random.PRNGKey(0)
    k1, k2, k3, k4 = jax.random.split(key, 4)

    # Test 1: ragged 2-D distances forced through the Pallas kernel with a
    # small row tile -> multi-block grid, partial final block, and in-kernel
    # tail masking all exercised at a small size.
    shape = (300, 257)  # 77100 elements, not a multiple of 1024
    pos = jax.random.uniform(k1, shape, dtype=jnp.float32) * 2.0
    neg = jax.random.uniform(k2, shape, dtype=jnp.float32) * 2.0
    loss = triplet_loss(pos, neg, margin=1.0, use_pallas=True, max_row_tile=64)
    jax.block_until_ready(loss)
    ref = jnp.mean(jnp.maximum(pos - neg + 1.0, 0.0))
    assert jnp.allclose(loss, ref, rtol=1e-5, atol=1e-6), (loss, ref)

    # Test 2: N a multiple of 1024 (zero-copy reshape path), bf16 inputs
    # streamed in their native dtype, default tile -> single block.
    N = 4096
    pos_b = (jax.random.uniform(k3, (N,), dtype=jnp.float32) * 2.0).astype(jnp.bfloat16)
    neg_b = (jax.random.uniform(k4, (N,), dtype=jnp.float32) * 2.0).astype(jnp.bfloat16)
    loss_b = triplet_loss(pos_b, neg_b, margin=0.5, use_pallas=True)
    jax.block_until_ready(loss_b)
    ref_b = jnp.mean(
        jnp.maximum(pos_b.astype(jnp.float32) - neg_b.astype(jnp.float32) + 0.5, 0.0)
    )
    assert jnp.allclose(loss_b, ref_b, rtol=1e-3, atol=1e-3), (loss_b, ref_b)

    # Test 3: tiny input takes the fused-jnp fallback path.
    M = 1000
    pos_s = jax.random.uniform(k1, (M,), dtype=jnp.float32) * 2.0
    neg_s = jax.random.uniform(k2, (M,), dtype=jnp.float32) * 2.0
    loss_s = triplet_loss(pos_s, neg_s, margin=1.0)
    jax.block_until_ready(loss_s)
    ref_s = jnp.mean(jnp.maximum(pos_s - neg_s + 1.0, 0.0))
    assert jnp.allclose(loss_s, ref_s, rtol=1e-6, atol=1e-6), (loss_s, ref_s)

    print("KERNEL_OK")
</pallas_src>

<mosaic_0001>
module attributes {stable_mosaic.version = 11 : i64} {
  func.func @_triplet_loss_kernel(%arg0: i32, %arg1: memref<64x128xf32, #tpu.memory_space<vmem>>, %arg2: memref<64x128xf32, #tpu.memory_space<vmem>>, %arg3: memref<1x8x128xf32, #tpu.memory_space<vmem>>) attributes {dimension_semantics = [#tpu.dimension_semantics<parallel>], iteration_bounds = array<i64: 10>, scalar_prefetch = 0 : i64, scratch_operands = 0 : i64, tpu.core_type = #tpu.core_type<tc>, window_params = [{transform_indices = @transform_0, window_bounds = array<i64: 64, 128>}, {transform_indices = @transform_1, window_bounds = array<i64: 64, 128>}, {transform_indices = @transform_2, window_bounds = array<i64: 1, 8, 128>}]} {
    %c0 = arith.constant 0 : index
    %c0_0 = arith.constant 0 : index
    %0 = vector.load %arg1[%c0, %c0_0] : memref<64x128xf32, #tpu.memory_space<vmem>>, vector<64x128xf32>
    %c0_1 = arith.constant 0 : index
    %c0_2 = arith.constant 0 : index
    %1 = vector.load %arg2[%c0_1, %c0_2] : memref<64x128xf32, #tpu.memory_space<vmem>>, vector<64x128xf32>
    %2 = arith.subf %0, %1 : vector<64x128xf32>
    %cst = arith.constant 1.000000e+00 : f32
    %3 = vector.broadcast %cst : f32 to vector<64x128xf32>
    %4 = arith.addf %2, %3 : vector<64x128xf32>
    %cst_3 = arith.constant 0.000000e+00 : f32
    %5 = vector.broadcast %cst_3 : f32 to vector<64x128xf32>
    %6 = arith.maximumf %4, %5 : vector<64x128xf32>
    %7 = tpu.iota {dimensions = array<i32: 0>} : vector<64x128xi32>
    %8 = tpu.iota {dimensions = array<i32: 1>} : vector<64x128xi32>
    %c64_i32 = arith.constant 64 : i32
    %9 = arith.muli %arg0, %c64_i32 : i32
    %10 = vector.broadcast %9 : i32 to vector<64x128xi32>
    %11 = arith.addi %10, %7 : vector<64x128xi32>
    %c128_i32 = arith.constant 128 : i32
    %12 = vector.broadcast %c128_i32 : i32 to vector<64x128xi32>
    %13 = arith.muli %11, %12 : vector<64x128xi32>
    %14 = arith.addi %13, %8 : vector<64x128xi32>
    %c77100_i32 = arith.constant 77100 : i32
    %15 = vector.broadcast %c77100_i32 : i32 to vector<64x128xi32>
    %16 = arith.cmpi slt, %14, %15 : vector<64x128xi32>
    %cst_4 = arith.constant 0.000000e+00 : f32
    %17 = vector.broadcast %cst_4 : f32 to vector<64x128xf32>
    %18 = arith.select %16, %6, %17 : vector<64x128xi1>, vector<64x128xf32>
    %19 = vector.shape_cast %18 : vector<64x128xf32> to vector<8x8x128xf32>
    %cst_5 = arith.constant dense<0.000000e+00> : vector<8x128xf32>
    %20 = vector.multi_reduction <add>, %19, %cst_5 [0] : vector<8x8x128xf32> to vector<8x128xf32>
    %c0_6 = arith.constant 0 : index
    %c0_7 = arith.constant 0 : index
    %c0_8 = arith.constant 0 : index
    %21 = vector.load %arg3[%c0_6, %c0_7, %c0_8] : memref<1x8x128xf32, #tpu.memory_space<vmem>>, vector<1x8x128xf32>
    %22 = vector.shape_cast %21 : vector<1x8x128xf32> to vector<8x128xf32>
    %23 = vector.shape_cast %20 : vector<8x128xf32> to vector<1x8x128xf32>
    tpu.vector_store %arg3[%c0_6, %c0_7, %c0_8], %23 {strides = array<i32>} : memref<1x8x128xf32, #tpu.memory_space<vmem>>, vector<1x8x128xf32>,
    return
  }
  func.func @transform_0(%arg0: i32) -> (i32, i32) {
    %c0_i32 = arith.constant 0 : i32
    %c0_i32_0 = arith.constant 0 : i32
    return %arg0, %c0_i32 : i32, i32
  }
  func.func @transform_1(%arg0: i32) -> (i32, i32) {
    %c0_i32 = arith.constant 0 : i32
    %c0_i32_0 = arith.constant 0 : i32
    return %arg0, %c0_i32 : i32, i32
  }
  func.func @transform_2(%arg0: i32) -> (i32, i32, i32) {
    %c0_i32 = arith.constant 0 : i32
    %c0_i32_0 = arith.constant 0 : i32
    %c0_i32_1 = arith.constant 0 : i32
    return %arg0, %c0_i32, %c0_i32_0 : i32, i32, i32
  }
}

</mosaic_0001>

<bundles_post_ra>
// kernel: tpu_custom_call.1
= control target key start
LH: loop header
LB: loop body
LE: loop exit
PB: predicated region body
PF: predicated region fallthrough
CT: control target
= control target key end

     0   :  { %7 = vsyncpa [#allocation3], 0  ;;  %s874_s0 = inlined_call_operand.hbm [shape: f32[608,128], index: 0, kind: input, shape index: {}]   ;;  %s875_s1 = inlined_call_operand.hbm [shape: f32[608,128], index: 1, kind: input, shape index: {}]   ;;  %s876_s2 = inlined_call_operand.hbm [shape: f32[10,8,128], index: 2, kind: output, shape index: {}]  }
   0x1   :  { %9 = vsyncpa [#allocation3 + $0x1], 0 }
   0x2   :  { %10 = vsyncpa [#allocation6], 0 }
   0x3   :  { %12 = vsyncpa [#allocation6 + $0x1], 0 }
   0x4   :  { %13 = vsyncpa [#allocation4], 0 }
   0x5   :  { %15 = vsyncpa [#allocation4 + $0x1], 0  ;;  %s649_s9 = smov 0   ;;  %s651_s10 = smov 0  }
   0x6   :  { %s653_s11 = smov 0   ;;  %s655_s12 = smov 0  }
   0x7 LB: > { %s670_s13 = sadd.s32 4294967295, %s625_s12   ;;  %s432_s14 = sadd.s32 4294967294, %s625_s12   ;;  %s625_s12 = sphi %s655_s12, %s887_s12   ;;  %s621_s11 = sphi %s653_s11, %s886_s11   ;;  %s617_s10 = sphi %s651_s10, %s885_s10   ;;  %s613_s9 = sphi %s649_s9, %s884_s9  }
   0x8   : > { %s674_s15 = sadd.s32 1, %s625_s12   ;;  %s28_s16 = sadd.s32 1, %s621_s11 }
   0x9   : > { %s25_s17 = ssub.s32 %s625_s12, %s674_s15  ;;  %p35_p0 = scmp.ne.s32.totalorder %s621_s11, %s617_s10 }
   0xa   : > { %p26_p1 = scmp.eq.s32.totalorder %s25_s17, 0  ;;  %p36_p2 = scmp.eq.s32.totalorder %s625_s12, 0 }
   0xb   : > { %p41_p3 = scmp.ne.s32.totalorder %s617_s10, %s613_s9  ;;  %p42_p4 = scmp.eq.s32.totalorder %s670_s13, 0 }
   0xc   : > { %s686_s18 = scalar_select %p26_p1, %s621_s11, %s28_s16  }
   0xd   : > { %p688_p5 = por %p36_p2, %p35_p0  ;;  %p692_p6 = por %p42_p4, %p41_p3 }
   0xe   : > { %p91_p7 = scmp.eq.s32.totalorder %s670_s13, 9  ;;  %p97_p8 = scmp.eq.s32.totalorder %s432_s14, 9 }
   0xf   : > { %p434_p11 = scmp.ge.s32.totalorder %s625_s12, 10 }
  0x10   : > { %p697_p9 = por %p91_p7, %p35_p0  ;;  %p701_p10 = por %p97_p8, %p41_p3 }
  0x11   : > { %113 = sbr.rel (%p434_p11) target bundleno = 86 (0x56), region = 16 }
  0x12   : > { %s880_s21 = scalar_select %p697_p9, 1, 0 }
  0x13   : > { %s881_s22 = scalar_select %p701_p10, 1, 0 }
  0x16   : > { %116 = sbr.rel (!%p688_p5) target bundleno = 54 (0x36), region = 20  ;;  %s117_s23 = sand.u32 (%p688_p5), 1, %s621_s11  }
  0x17   : > { %s436_s24 = sshll.u32 (%p688_p5), %s625_s12, 3  ;;  %s435_s25 = sshll.u32 (%p688_p5), %s117_s23, 6 }
  0x18   : > { %s123_s26 = ssub.s32 (%p688_p5), 76, %s436_s24  ;;  %s713_s29 = scalar_lea.sflag (%p688_p5), [#allocation3], %s117_s23 }
  0x19   : > { %p124_p12 = scmp.lt.s32.totalorder (%p688_p5), %s123_s26, 8  ;;  %s121_s30 = scalar_lea.vmem (%p688_p5), [#allocation2], %s435_s25 }
  0x1b   : > { %s889_s26 = smov (!%p124_p12, %s123_s26), 8 }
  0x1c   : > { %s710_s27 = sshll.u32 %s889_s26, 7 }
  0x1d   : > { %s128_s28 = ssub.s32 1024, %s710_s27 }
  0x1e   : > { %129 = vsyncadd %s713_s29, %s128_s28  ;;  %p438_p13 = scmp.ne.s32.totalorder %s710_s27, 0  ;;  %s458_s3 = sshll.u32 %s625_s12, 10 }
  0x1f   : > { %s721_s6 = scalar_lea.hbm %s874_s0, %s458_s3  ;;  %s134_s7 = sshll.u32 %s121_s30, 4  ;;  %s723_s7 = int_to_ptr.vmem [resolvable:$true] %s134_s7 }
  0x20   : > { %s505_s8 = scalar_lea.hbm %s721_s6, %s710_s27  ;;  %s509_s17 = scalar_lea.hbm %s874_s0, 9728 }
  0x21   : > { %p506_p0 = scmp.ne.s32.totalorder %s721_s6, %s505_s8  ;;  %p510_p3 = scmp.lt.s32.totalorder %s721_s6, %s874_s0 }
  0x22   : > { %p511_p4 = scmp.lt.s32.totalorder %s509_s17, %s505_s8 }
  0x23   : > { %p507_p1 = pnand %p506_p0, %p438_p13 }
  0x24   : > { %p512_p7 = por %p511_p4, %p510_p3 }
  0x25   : > { %p508_p2 = pneg %p507_p1 }
  0x27   : > { %p513_p8 = pnand %p512_p7, %p508_p2 }
  0x29   : > { %516 = shalt.err (!%p513_p8)
}
  0x2a   : > { %s517_s25 = scalar_lea.vmem %s723_s7, %s710_s27  ;;  %s627_s26 = smov [#allocation2]  }
  0x2b   : > { %p518_p11 = scmp.ne.s32.totalorder %s723_s7, %s517_s25  ;;  %s521_s28 = sshll.u32 %s627_s26, 4  ;;  %s522_s28 = int_to_ptr.vmem [resolvable:$false] %s521_s28 }
  0x2c   : > { %s523_s30 = scalar_lea.vmem %s522_s28, 2048  ;;  %p524_p1 = scmp.lt.s32.totalorder %s723_s7, %s522_s28 }
  0x2d   : > { %p519_p12 = pnand %p518_p11, %p438_p13  ;;  %p525_p10 = scmp.lt.s32.totalorder %s523_s30, %s517_s25 }
  0x2f   : > { %p520_p0 = pneg %p519_p12  ;;  %p526_p9 = por %p525_p10, %p524_p1 }
  0x31   : > { %p527_p3 = pnand %p526_p9, %p520_p0 }
  0x33   : > { %530 = shalt.err (!%p527_p3)
}
  0x34   : > { %s628_s3 = smov 128   ;;  %s629_s4 = smov 8  }
  0x35   : > { %140 = dma.hbm_to_vmem [thread:$0]  (%p438_p13), %s721_s6, %s710_s27, %s723_s7, %s713_s29, %s628_s3, %s628_s3, %s629_s4  }
  0x36 PF: > { %143 = sbr.rel (!%p688_p5) target bundleno = 86 (0x56), region = 24  ;;  %s144_s5 = sand.u32 (%p688_p5), 1, %s621_s11  }
  0x37   : > { %s443_s8 = sshll.u32 (%p688_p5), %s625_s12, 3  ;;  %s442_s14 = sshll.u32 (%p688_p5), %s144_s5, 6 }
  0x38   : > { %s150_s16 = ssub.s32 (%p688_p5), 76, %s443_s8  ;;  %s756_s24 = scalar_lea.sflag (%p688_p5), [#allocation6], %s144_s5 }
  0x39   : > { %p151_p9 = scmp.lt.s32.totalorder (%p688_p5), %s150_s16, 8  ;;  %s148_s27 = scalar_lea.vmem (%p688_p5), [#allocation5], %s442_s14 }
  0x3b   : > { %s891_s16 = smov (!%p151_p9, %s150_s16), 8 }
  0x3c   : > { %s753_s17 = sshll.u32 %s891_s16, 7 }
  0x3d   : > { %s155_s23 = ssub.s32 1024, %s753_s17 }
  0x3e   : > { %156 = vsyncadd %s756_s24, %s155_s23  ;;  %p445_p5 = scmp.ne.s32.totalorder %s753_s17, 0  ;;  %s459_s19 = sshll.u32 %s625_s12, 10 }
  0x3f   : > { %s764_s7 = scalar_lea.hbm %s875_s1, %s459_s19  ;;  %s161_s25 = sshll.u32 %s148_s27, 4  ;;  %s766_s25 = int_to_ptr.vmem [resolvable:$true] %s161_s25 }
  0x40   : > { %s531_s26 = scalar_lea.hbm %s764_s7, %s753_s17  ;;  %s535_s3 = scalar_lea.hbm %s875_s1, 9728 }
  0x41   : > { %p532_p10 = scmp.ne.s32.totalorder %s764_s7, %s531_s26  ;;  %p536_p4 = scmp.lt.s32.totalorder %s764_s7, %s875_s1 }
  0x42   : > { %p537_p7 = scmp.lt.s32.totalorder %s535_s3, %s531_s26 }
  0x43   : > { %p533_p13 = pnand %p532_p10, %p445_p5 }
  0x44   : > { %p538_p8 = por %p537_p7, %p536_p4 }
  0x45   : > { %p534_p2 = pneg %p533_p13 }
  0x47   : > { %p539_p11 = pnand %p538_p8, %p534_p2 }
  0x49   : > { %542 = shalt.err (!%p539_p11)
}
  0x4a   : > { %s543_s8 = scalar_lea.vmem %s766_s25, %s753_s17  ;;  %s630_s14 = smov [#allocation5]  }
  0x4b   : > { %p544_p12 = scmp.ne.s32.totalorder %s766_s25, %s543_s8  ;;  %s547_s16 = sshll.u32 %s630_s14, 4  ;;  %s548_s16 = int_to_ptr.vmem [resolvable:$false] %s547_s16 }
  0x4c   : > { %s549_s23 = scalar_lea.vmem %s548_s16, 2048  ;;  %p550_p3 = scmp.lt.s32.totalorder %s766_s25, %s548_s16 }
  0x4d   : > { %p545_p0 = pnand %p544_p12, %p445_p5  ;;  %p551_p9 = scmp.lt.s32.totalorder %s549_s23, %s543_s8 }
  0x4f   : > { %p546_p1 = pneg %p545_p0  ;;  %p552_p10 = por %p551_p9, %p550_p3 }
  0x51   : > { %p553_p13 = pnand %p552_p10, %p546_p1 }
  0x53   : > { %556 = shalt.err (!%p553_p13)
}
  0x54   : > { %s631_s27 = smov 128   ;;  %s632_s19 = smov 8  }
  0x55   : > { %167 = dma.hbm_to_vmem [thread:$0]  (%p445_p5), %s764_s7, %s753_s17, %s766_s25, %s756_s24, %s631_s27, %s631_s27, %s632_s19  }
  0x56 PF: > { %p449_p2 = scmp.ge.s32.totalorder %s625_s12, 1  ;;  %p169_p4 = scmp.lt.s32.totalorder %s625_s12, 11 }
  0x58   : > { %p170_p7 = pnand %p449_p2, %p169_p4 }
  0x59   : > { %s795_s29 = sand.u32 (!%p170_p7), 1, %s617_s10  }
  0x5a   : > { %173 = sbr.rel (%p170_p7) target bundleno = 142 (0x8e), region = 28  ;;  %s450_s6 = sshll.u32 (!%p170_p7), %s795_s29, 6 }
  0x5b   : > { %s176_s26 = scalar_lea.sflag (!%p170_p7), [#allocation3], %s795_s29  ;;  %s799_s28 = scalar_lea.vmem (!%p170_p7), [#allocation2], %s450_s6 }
  0x5f   : > { %600 = dma.done.wait (%p692_p6), %s176_s26, 1024  }
  0x60   : > { %602 = vsyncadd (%p692_p6), %s176_s26, 4294966272  ;;  %s185_s17 = scalar_lea.sflag [#allocation6], %s795_s29  ;;  %s806_s24 = scalar_lea.vmem [#allocation5], %s450_s6 }
  0x61   : > { %604 = dma.done.wait (%p692_p6), %s185_s17, 1024  }
  0x62   : > { %606 = vsyncadd (%p692_p6), %s185_s17, 4294966272  ;;  %v264_v0 = vlaneseq  ;;  %s453_s7 = sshll.u32 %s670_s13, 6  ;;  %v224_v9 = vld [vmem:[%s799_s28] sm:$0xff]  ;;  %v225_v11 = vld [vmem:[%s799_s28 + $0x8] sm:$0xff]  ;;  %s452_s20 = sshll.u32 %s795_s29, 3 }
  0x63   : > { %v276_v2 = vstv %s453_s7  ;;  %v226_v12 = vld [vmem:[%s799_s28 + $0x10] sm:$0xff]  ;;  %v227_v13 = vld [vmem:[%s799_s28 + $0x18] sm:$0xff]  ;;  %v228_v16 = vld [vmem:[%s799_s28 + $0x20] sm:$0xff]  ;;  %s213_s25 = scalar_lea.vmem [#allocation7], %s452_s20  ;;  %s455_s3 = sshll.u32 %s670_s13, 7 }
  0x64   : > { %v265_v1 = vshrl.u32 %v264_v0, 7  ;;  %v232_v17 = vld [vmem:[%s806_s24] sm:$0xff]  ;;  %v819_v19 = vand.u32 127, %v264_v0  ;;  %v233_v21 = vld [vmem:[%s806_s24 + $0x8] sm:$0xff]  ;;  %v234_v22 = vld [vmem:[%s806_s24 + $0x10] sm:$0xff]  ;;  %s339_s30 = sshll.u32 %s213_s25, 4  ;;  %s337_s8 = scalar_lea.hbm %s876_s2, %s455_s3  ;;  %s340_s30 = int_to_ptr.vmem [resolvable:$true] %s339_s30 }
  0x65   : > { %v235_v23 = vld [vmem:[%s806_s24 + $0x18] sm:$0xff]  ;;  %v240_v24 = vsub.f32 %v224_v9, %v232_v17  ;;  %v236_v28 = vld [vmem:[%s806_s24 + $0x20] sm:$0xff]  ;;  %v241_v29 = vsub.f32 %v225_v11, %v233_v21  ;;  %v242_v30 = vsub.f32 %v226_v12, %v234_v22  ;;  %v229_v33 = vld [vmem:[%s799_s28 + $0x28] sm:$0xff]  ;;  %s326_s14 = scalar_lea.sflag [#allocation4], %s795_s29  ;;  %s557_s16 = scalar_lea.vmem %s340_s30, 128 }
  0x66   : > { %v266_v3 = vadd.s32 8, %v265_v1  ;;  %v267_v4 = vadd.s32 16, %v265_v1  ;;  %v268_v5 = vadd.s32 24, %v265_v1  ;;  %v269_v6 = vadd.s32 32, %v265_v1  ;;  %v237_v34 = vld [vmem:[%s806_s24 + $0x28] sm:$0xff]  ;;  %v230_v42 = vld [vmem:[%s799_s28 + $0x30] sm:$0xff]  ;;  %p558_p6 = scmp.ne.s32.totalorder %s340_s30, %s557_s16 }
  0x67   : > { %v277_v7 = vadd.s32 %v276_v2, %v265_v1  ;;  %v270_v10 = vadd.s32 40, %v265_v1  ;;  %v271_v14 = vadd.s32 48, %v265_v1  ;;  %v272_v18 = vadd.s32 56, %v265_v1  ;;  %v238_v43 = vld [vmem:[%s806_s24 + $0x30] sm:$0xff]  ;;  %v231_v51 = vld [vmem:[%s799_s28 + $0x38] sm:$0xff]  ;;  %p882_p5 = scmp.ne.s32.totalorder %s880_s21, 0 }
  0x68   : > { %v278_v8 = vadd.s32 %v276_v2, %v266_v3  ;;  %v279_v15 = vadd.s32 %v276_v2, %v267_v4  ;;  %v280_v20 = vadd.s32 %v276_v2, %v268_v5  ;;  %v281_v25 = vadd.s32 %v276_v2, %v269_v6  ;;  %v239_v52 = vld [vmem:[%s806_s24 + $0x38] sm:$0xff]  ;;  %s633_s23 = smov [#allocation7]  }
  0x69   : > { %v285_v26 = vmul.u32 128, %v277_v7  ;;  %v243_v31 = vsub.f32 %v227_v13, %v235_v23  ;;  %v282_v32 = vadd.s32 %v276_v2, %v270_v10  ;;  %v248_v35 = vadd.f32 1.0, %v240_v24  ;;  %p559_p8 = pnand %p558_p6, %p882_p5  ;;  %s561_s27 = sshll.u32 %s633_s23, 4  ;;  %s562_s27 = int_to_ptr.vmem [resolvable:$false] %s561_s27 }
  0x6a   : > { %v286_v27 = vmul.u32 128, %v278_v8  ;;  %v283_v36 = vadd.s32 %v276_v2, %v271_v14  ;;  %v287_v37 = vmul.u32 128, %v279_v15  ;;  %v244_v38 = vsub.f32 %v228_v16, %v236_v28  ;;  %s563_s19 = scalar_lea.vmem %s562_s27, 256  ;;  %p564_p12 = scmp.lt.s32.totalorder %s340_s30, %s562_s27 }
  0x6b   : > { %v249_v39 = vadd.f32 1.0, %v241_v29  ;;  %v250_v40 = vadd.f32 1.0, %v242_v30  ;;  %v288_v41 = vmul.u32 128, %v280_v20  ;;  %v284_v44 = vadd.s32 %v276_v2, %v272_v18  ;;  %p560_p11 = pneg %p559_p8  ;;  %p565_p0 = scmp.lt.s32.totalorder %s563_s19, %s557_s16 }
  0x6c   : > { %v289_v45 = vmul.u32 128, %v281_v25  ;;  %v293_v46 = vadd.s32 %v285_v26, %v819_v19  ;;  %v294_v47 = vadd.s32 %v286_v27, %v819_v19  ;;  %v245_v48 = vsub.f32 %v229_v33, %v237_v34 }
  0x6d   : > { %v251_v49 = vadd.f32 1.0, %v243_v31  ;;  %v290_v50 = vmul.u32 128, %v282_v32  ;;  %v256_v53 = vmax.f32 %v248_v35, 0.0  ;;  %v257_v54 = vmax.f32 %v249_v39, 0.0  ;;  %p566_p1 = por %p565_p0, %p564_p12 }
  0x6e   : > { %v291_v55 = vmul.u32 128, %v283_v36  ;;  %v295_v56 = vadd.s32 %v287_v37, %v819_v19  ;;  %v246_v57 = vsub.f32 %v230_v42, %v238_v43  ;;  %v252_v58 = vadd.f32 1.0, %v244_v38 }
  0x6f   : > { %v258_v59 = vmax.f32 %v250_v40, 0.0  ;;  %v296_v60 = vadd.s32 %v288_v41, %v819_v19  ;;  %v292_v61 = vmul.u32 128, %v284_v44  ;;  %v297_v62 = vadd.s32 %v289_v45, %v819_v19  ;;  %p567_p3 = pnand %p566_p1, %p560_p11 }
  0x70   : > { %vm301_vm0 = vcmp.lt.s32.totalorder %v293_v46, 77100  ;;  %vm302_vm1 = vcmp.lt.s32.totalorder %v294_v47, 77100  ;;  %v247_v63 = vsub.f32 %v231_v51, %v239_v52  ;;  %v253_v0 = vadd.f32 1.0, %v245_v48 }
  0x71   : > { %v259_v1 = vmax.f32 %v251_v49, 0.0  ;;  %vm303_vm2 = vcmp.lt.s32.totalorder %v295_v56, 77100  ;;  %v298_v2 = vadd.s32 %v290_v50, %v819_v19  ;;  %vm304_vm3 = vcmp.lt.s32.totalorder %v296_v60, 77100 }
  0x72   : > { %v309_v3 = vsel %vm301_vm0, %v256_v53, 0.0  ;;  %v310_v4 = vsel %vm302_vm1, %v257_v54, 0.0  ;;  %v254_v5 = vadd.f32 1.0, %v246_v57  ;;  %v260_v6 = vmax.f32 %v252_v58, 0.0 }
  0x73   : > { %v311_v7 = vsel %vm303_vm2, %v258_v59, 0.0  ;;  %v299_v8 = vadd.s32 %v291_v55, %v819_v19  ;;  %vm305_vm4 = vcmp.lt.s32.totalorder %v297_v62, 77100  ;;  %v317_v9 = vadd.f32 %v310_v4, %v309_v3 }
  0x74   : > { %v255_v10 = vadd.f32 1.0, %v247_v63  ;;  %v261_v11 = vmax.f32 %v253_v0, 0.0  ;;  %v312_v12 = vsel %vm304_vm3, %v259_v1, 0.0  ;;  %v300_v13 = vadd.s32 %v292_v61, %v819_v19 }
  0x75   : > { %vm306_vm5 = vcmp.lt.s32.totalorder %v298_v2, 77100  ;;  %v318_v14 = vadd.f32 %v317_v9, %v311_v7  ;;  %v262_v15 = vmax.f32 %v254_v5, 0.0  ;;  %v313_v16 = vsel %vm305_vm4, %v260_v6, 0.0 }
  0x76   : > { %vm307_vm6 = vcmp.lt.s32.totalorder %v299_v8, 77100  ;;  %v263_v18 = vmax.f32 %v255_v10, 0.0  ;;  %v314_v20 = vsel %vm306_vm5, %v261_v11, 0.0  ;;  %vm308_vm7 = vcmp.lt.s32.totalorder %v300_v13, 77100 }
  0x77   : > { %v319_v17 = vadd.f32 %v318_v14, %v312_v12  ;;  %v315_v22 = vsel %vm307_vm6, %v262_v15, 0.0 }
  0x78   : > { %v316_v24 = vsel %vm308_vm7, %v263_v18, 0.0 }
  0x79   : > { %v320_v21 = vadd.f32 %v319_v17, %v313_v16 }
  0x7b   : > { %v321_v23 = vadd.f32 %v320_v21, %v314_v20 }
  0x7d   : > { %v322_v19 = vadd.f32 %v321_v23, %v315_v22 }
  0x7f   : > { %v323_v25 = vadd.f32 %v322_v19, %v316_v24 }
  0x81   : > { %324 = vst [vmem:[%s213_s25] sm:$0xff] %v323_v25 }
  0x82   : > { %570 = shalt.err (!%p567_p3)
}
  0x83   : > { %s571_s13 = scalar_lea.hbm %s337_s8, 128  ;;  %s575_s26 = scalar_lea.hbm %s876_s2, 1280 }
  0x84   : > { %p572_p9 = scmp.ne.s32.totalorder %s337_s8, %s571_s13  ;;  %p576_p2 = scmp.lt.s32.totalorder %s337_s8, %s876_s2 }
  0x85   : > { %p577_p4 = scmp.lt.s32.totalorder %s575_s26, %s571_s13 }
  0x86   : > { %p573_p10 = pnand %p572_p9, %p882_p5 }
  0x87   : > { %p578_p7 = por %p577_p4, %p576_p2 }
  0x88   : > { %p574_p13 = pneg %p573_p10 }
  0x8a   : > { %p579_p6 = pnand %p578_p7, %p574_p13 }
  0x8c   : > { %582 = shalt.err (!%p579_p6)
}
  0x8d   : > { %462 = dma.vmem_to_hbm [thread:$0]  (%p882_p5), %s340_s30, 128, %s337_s8, %s326_s14  }
  0x8e PF: > { %p468_p8 = scmp.ge.s32.totalorder %s625_s12, 2  ;;  %s351_s24 = sand.u32 1, %s613_s9  }
  0x8f   : > { %p883_p11 = scmp.ne.s32.totalorder %s881_s22, 0  ;;  %s352_s7 = scalar_lea.sflag [#allocation4], %s351_s24 }
  0x91   : > { %p465_p12 = pnand %p468_p8, %p883_p11 }
  0x93   : > { %p466_p0 = pneg %p465_p12 }
  0x95   : > { %608 = dma.done.wait (%p466_p0), %s352_s7, 128  }
  0x96   : > { %610 = vsyncadd (%p466_p0), %s352_s7, 4294967168  ;;  %p18_p1 = scmp.ge.s32.totalorder %s674_s15, 12   ;;  %s884_s9 = smov %s617_s10 }
  0x97   : > { %s885_s10 = smov %s621_s11  ;;  %s886_s11 = smov %s686_s18 }
  0x98   : > { %s887_s12 = smov %s674_s15  ;;  %20 = sbr.rel (!%p18_p1) target bundleno = 7 (0x7), region = 86 }
  0x9d   :  { %357 = vsyncpa [#allocation3], 1 }
  0x9e   :  { %359 = vsyncpa [#allocation3 + $0x1], 1 }
  0x9f   :  { %360 = vsyncpa [#allocation6], 1 }
  0xa0   :  { %362 = vsyncpa [#allocation6 + $0x1], 1 }
  0xa1   :  { %363 = vsyncpa [#allocation4], 1 }
  0xa2   :  { %365 = vsyncpa [#allocation4 + $0x1], 1 }

</bundles_post_ra>
